<compile_context>
chip_gen: v7x
topology: tpu7x:2x2x1
jax: 0.10.0
libtpu: 0.0.40
codegen_flags: <defaults>
</compile_context>

<pallas_src>
import jax
import jax.numpy as jnp
from jax.experimental import pallas as pl
from jax.experimental.pallas import tpu as pltpu


NEG_SLOPE = 0.01  # PyTorch nn.LeakyReLU default negative_slope


def _round_up(x, m):
    return (x + m - 1) // m * m


def _disc_kernel(x_ref, w1_ref, b1_ref, w2_ref, b2_ref, o_ref):
    bt = x_ref.shape[0]          # batch tile (static)
    h_dim = w1_ref.shape[1]      # hidden width (static)
    # Lane-chunk size: keep each f32 [bt, ch] chunk near 8 vregs so the fused
    # epilogue never spills, while staying a multiple of 128 lanes.
    ch = max(128, min(h_dim, ((8192 // bt) // 128) * 128))

    x = x_ref[...]                                   # [bt, D] bf16 (pre-cast)
    z = jnp.zeros((bt, 1), jnp.float32)
    for c in range(0, h_dim, ch):                    # static chunk loop
        e = min(c + ch, h_dim)
        # First linear layer chunk: bf16 x bf16 on the MXU, f32 accumulate.
        hc = jnp.dot(x, w1_ref[:, c:e], preferred_element_type=jnp.float32)
        hc = hc + b1_ref[:, c:e].astype(jnp.float32)
        # LeakyReLU in f32 on the VPU.
        hc = jnp.where(hc > 0.0, hc, NEG_SLOPE * hc)
        # Second layer contribution: lane-dense multiply + cross-lane reduce
        # (VPU + XLU) instead of a degenerate N=1 MXU matmul.
        z = z + jnp.sum(hc * w2_ref[:, c:e].astype(jnp.float32),
                        axis=-1, keepdims=True)
    z = z + b2_ref[0]            # scalar bias from SMEM
    # Sigmoid (EUP exp); saturates correctly at both tails.
    o_ref[...] = 1.0 / (1.0 + jnp.exp(-z))


def discriminator_forward(x, w1, b1, w2, b2, *, batch_block=256):
    """x: [B, D] float, w1: [D, H] bf16, b1: [1, H] bf16, w2: [1, H] bf16,
    b2: [1] f32  ->  [B, 1] f32 probabilities."""
    B, D = x.shape
    H = w1.shape[1]

    # Batch tile: single grid step at small B; a multiple of the MXU M dimension
    # (256 on v6e/v7x) once the batch axis is large enough to matter.
    if B <= batch_block:
        bt = _round_up(B, 8)
    else:
        bt = batch_block
    b_pad = _round_up(B, bt)

    x = x.astype(jnp.bfloat16)          # cast in the wrapper, not in-kernel
    if b_pad != B:
        x = jnp.pad(x, ((0, b_pad - B), (0, 0)))
    n_tiles = b_pad // bt

    out = pl.pallas_call(
        _disc_kernel,
        out_shape=jax.ShapeDtypeStruct((b_pad, 1), jnp.float32),
        grid=(n_tiles,),
        in_specs=[
            pl.BlockSpec((bt, D), lambda i: (i, 0)),   # x   tiled over batch
            pl.BlockSpec((D, H), lambda i: (0, 0)),    # w1  VMEM-resident
            pl.BlockSpec((1, H), lambda i: (0, 0)),    # b1  VMEM-resident
            pl.BlockSpec((1, H), lambda i: (0, 0)),    # w2  VMEM-resident
            pl.BlockSpec(memory_space=pltpu.SMEM),     # b2  scalar in SMEM
        ],
        out_specs=pl.BlockSpec((bt, 1), lambda i: (i, 0)),
        compiler_params=pltpu.CompilerParams(
            dimension_semantics=("parallel",)),
    )(x, w1, b1, w2, b2)
    return out[:B]


def init_params(key, x_dim, attr_dim, hidden=4096):
    """Deterministic synthetic init mirroring nn.Linear shapes.

    PyTorch stores Linear weights as [out, in]; we store the transpose
    [in, out] so the kernel can do x @ W directly (same math).  w1/b1/w2 are
    kept in bf16 (halves their HBM transfer); b2 is a 1-element f32 scalar."""
    d_in = x_dim + attr_dim
    k1, k2, k3, k4 = jax.random.split(key, 4)
    lim1 = 1.0 / jnp.sqrt(float(d_in))
    lim2 = 1.0 / jnp.sqrt(float(hidden))
    w1 = jax.random.uniform(k1, (d_in, hidden), jnp.float32, -lim1, lim1)
    b1 = jax.random.uniform(k2, (1, hidden), jnp.float32, -lim1, lim1)
    w2 = jax.random.uniform(k3, (1, hidden), jnp.float32, -lim2, lim2)
    b2 = jax.random.uniform(k4, (1,), jnp.float32, -lim2, lim2)
    return (w1.astype(jnp.bfloat16), b1.astype(jnp.bfloat16),
            w2.astype(jnp.bfloat16), b2)


if __name__ == "__main__":
    # Small, forward-consistent shapes: batch=8, x_dim=24, attr_dim=8 -> D=32;
    # hidden=4096 comes from the module definition.
    B, X_DIM, ATTR_DIM, HIDDEN = 8, 24, 8, 4096

    key = jax.random.PRNGKey(0)
    kx, kp = jax.random.split(key)
    x = jax.random.normal(kx, (B, X_DIM + ATTR_DIM), jnp.float32)
    w1, b1, w2, b2 = init_params(kp, X_DIM, ATTR_DIM, HIDDEN)

    out = discriminator_forward(x, w1, b1, w2, b2)
    out = jax.block_until_ready(out)

    # Plain-JAX reference of the same forward pass (same bf16 weights, f32 math).
    h_ref = jnp.dot(x.astype(jnp.bfloat16), w1,
                    preferred_element_type=jnp.float32)
    h_ref = h_ref + b1.astype(jnp.float32)
    h_ref = jnp.where(h_ref > 0.0, h_ref, NEG_SLOPE * h_ref)
    ref = jax.nn.sigmoid(
        jnp.sum(h_ref * w2.astype(jnp.float32), axis=-1, keepdims=True) + b2[0])

    assert out.shape == (B, 1)
    assert jnp.allclose(out, ref, atol=1e-4, rtol=1e-4), \
        float(jnp.max(jnp.abs(out - ref)))

    print("KERNEL_OK")
</pallas_src>

<mosaic_0001>
module attributes {stable_mosaic.version = 11 : i64} {
  func.func @_disc_kernel(%arg0: i32, %arg1: memref<8x32xbf16, #tpu.memory_space<vmem>>, %arg2: memref<32x4096xbf16, #tpu.memory_space<vmem>>, %arg3: memref<1x4096xbf16, #tpu.memory_space<vmem>>, %arg4: memref<1x4096xbf16, #tpu.memory_space<vmem>>, %arg5: memref<1xf32, #tpu.memory_space<smem>>, %arg6: memref<8x1xf32, #tpu.memory_space<vmem>>) attributes {dimension_semantics = [#tpu.dimension_semantics<parallel>], iteration_bounds = array<i64: 1>, scalar_prefetch = 0 : i64, scratch_operands = 0 : i64, tpu.core_type = #tpu.core_type<tc>, window_params = [{transform_indices = @transform_0, window_bounds = array<i64: 8, 32>}, {pipeline_mode = #tpu.pipeline_mode<synchronous>, transform_indices = @transform_1, window_bounds = array<i64: 32, 4096>}, {pipeline_mode = #tpu.pipeline_mode<synchronous>, transform_indices = @transform_2, window_bounds = array<i64: 1, 4096>}, {pipeline_mode = #tpu.pipeline_mode<synchronous>, transform_indices = @transform_3, window_bounds = array<i64: 1, 4096>}, {transform_indices = @transform_4, window_bounds = array<i64: 1>}, {transform_indices = @transform_5, window_bounds = array<i64: 8, 1>}]} {
    %c0 = arith.constant 0 : index
    %c0_0 = arith.constant 0 : index
    %0 = vector.load %arg1[%c0, %c0_0] : memref<8x32xbf16, #tpu.memory_space<vmem>>, vector<8x32xbf16>
    %cst = arith.constant 0.000000e+00 : f32
    %1 = vector.broadcast %cst : f32 to vector<8x1xf32>
    %c0_1 = arith.constant 0 : index
    %c0_2 = arith.constant 0 : index
    %2 = vector.load %arg2[%c0_1, %c0_2] : memref<32x4096xbf16, #tpu.memory_space<vmem>>, vector<32x1024xbf16>
    %cst_3 = arith.constant dense<0.000000e+00> : vector<8x1024xf32>
    %3 = tpu.matmul %0, %2, %cst_3 {dimension_numbers = #tpu.dot_dimension_numbers<[1], [0], [0], [1], [0, 0, 1, 1], [], []>} : vector<8x32xbf16>, vector<32x1024xbf16>, vector<8x1024xf32> -> vector<8x1024xf32>
    %c0_4 = arith.constant 0 : index
    %c0_5 = arith.constant 0 : index
    %4 = vector.load %arg3[%c0_4, %c0_5] : memref<1x4096xbf16, #tpu.memory_space<vmem>>, vector<1x1024xbf16>
    %5 = arith.extf %4 : vector<1x1024xbf16> to vector<1x1024xf32>
    %6 = vector.broadcast %5 : vector<1x1024xf32> to vector<8x1024xf32>
    %7 = arith.addf %3, %6 : vector<8x1024xf32>
    %cst_6 = arith.constant 0.000000e+00 : f32
    %8 = vector.broadcast %cst_6 : f32 to vector<8x1024xf32>
    %9 = arith.cmpf ogt, %7, %8 : vector<8x1024xf32>
    %cst_7 = arith.constant 0.00999999977 : f32
    %10 = vector.broadcast %cst_7 : f32 to vector<8x1024xf32>
    %11 = arith.mulf %10, %7 : vector<8x1024xf32>
    %12 = arith.select %9, %7, %11 : vector<8x1024xi1>, vector<8x1024xf32>
    %c0_8 = arith.constant 0 : index
    %c0_9 = arith.constant 0 : index
    %13 = vector.load %arg4[%c0_8, %c0_9] : memref<1x4096xbf16, #tpu.memory_space<vmem>>, vector<1x1024xbf16>
    %14 = arith.extf %13 : vector<1x1024xbf16> to vector<1x1024xf32>
    %15 = vector.broadcast %14 : vector<1x1024xf32> to vector<8x1024xf32>
    %16 = arith.mulf %12, %15 : vector<8x1024xf32>
    %cst_10 = arith.constant dense<0.000000e+00> : vector<8xf32>
    %17 = vector.multi_reduction <add>, %16, %cst_10 [1] : vector<8x1024xf32> to vector<8xf32>
    %18 = vector.shape_cast %17 : vector<8xf32> to vector<8x1xf32>
    %19 = arith.addf %1, %18 : vector<8x1xf32>
    %c0_11 = arith.constant 0 : index
    %c1024 = arith.constant 1024 : index
    %20 = vector.load %arg2[%c0_11, %c1024] : memref<32x4096xbf16, #tpu.memory_space<vmem>>, vector<32x1024xbf16>
    %cst_12 = arith.constant dense<0.000000e+00> : vector<8x1024xf32>
    %21 = tpu.matmul %0, %20, %cst_12 {dimension_numbers = #tpu.dot_dimension_numbers<[1], [0], [0], [1], [0, 0, 1, 1], [], []>} : vector<8x32xbf16>, vector<32x1024xbf16>, vector<8x1024xf32> -> vector<8x1024xf32>
    %c0_13 = arith.constant 0 : index
    %c1024_14 = arith.constant 1024 : index
    %22 = vector.load %arg3[%c0_13, %c1024_14] : memref<1x4096xbf16, #tpu.memory_space<vmem>>, vector<1x1024xbf16>
    %23 = arith.extf %22 : vector<1x1024xbf16> to vector<1x1024xf32>
    %24 = vector.broadcast %23 : vector<1x1024xf32> to vector<8x1024xf32>
    %25 = arith.addf %21, %24 : vector<8x1024xf32>
    %cst_15 = arith.constant 0.000000e+00 : f32
    %26 = vector.broadcast %cst_15 : f32 to vector<8x1024xf32>
    %27 = arith.cmpf ogt, %25, %26 : vector<8x1024xf32>
    %cst_16 = arith.constant 0.00999999977 : f32
    %28 = vector.broadcast %cst_16 : f32 to vector<8x1024xf32>
    %29 = arith.mulf %28, %25 : vector<8x1024xf32>
    %30 = arith.select %27, %25, %29 : vector<8x1024xi1>, vector<8x1024xf32>
    %c0_17 = arith.constant 0 : index
    %c1024_18 = arith.constant 1024 : index
    %31 = vector.load %arg4[%c0_17, %c1024_18] : memref<1x4096xbf16, #tpu.memory_space<vmem>>, vector<1x1024xbf16>
    %32 = arith.extf %31 : vector<1x1024xbf16> to vector<1x1024xf32>
    %33 = vector.broadcast %32 : vector<1x1024xf32> to vector<8x1024xf32>
    %34 = arith.mulf %30, %33 : vector<8x1024xf32>
    %cst_19 = arith.constant dense<0.000000e+00> : vector<8xf32>
    %35 = vector.multi_reduction <add>, %34, %cst_19 [1] : vector<8x1024xf32> to vector<8xf32>
    %36 = vector.shape_cast %35 : vector<8xf32> to vector<8x1xf32>
    %37 = arith.addf %19, %36 : vector<8x1xf32>
    %c0_20 = arith.constant 0 : index
    %c2048 = arith.constant 2048 : index
    %38 = vector.load %arg2[%c0_20, %c2048] : memref<32x4096xbf16, #tpu.memory_space<vmem>>, vector<32x1024xbf16>
    %cst_21 = arith.constant dense<0.000000e+00> : vector<8x1024xf32>
    %39 = tpu.matmul %0, %38, %cst_21 {dimension_numbers = #tpu.dot_dimension_numbers<[1], [0], [0], [1], [0, 0, 1, 1], [], []>} : vector<8x32xbf16>, vector<32x1024xbf16>, vector<8x1024xf32> -> vector<8x1024xf32>
    %c0_22 = arith.constant 0 : index
    %c2048_23 = arith.constant 2048 : index
    %40 = vector.load %arg3[%c0_22, %c2048_23] : memref<1x4096xbf16, #tpu.memory_space<vmem>>, vector<1x1024xbf16>
    %41 = arith.extf %40 : vector<1x1024xbf16> to vector<1x1024xf32>
    %42 = vector.broadcast %41 : vector<1x1024xf32> to vector<8x1024xf32>
    %43 = arith.addf %39, %42 : vector<8x1024xf32>
    %cst_24 = arith.constant 0.000000e+00 : f32
    %44 = vector.broadcast %cst_24 : f32 to vector<8x1024xf32>
    %45 = arith.cmpf ogt, %43, %44 : vector<8x1024xf32>
    %cst_25 = arith.constant 0.00999999977 : f32
    %46 = vector.broadcast %cst_25 : f32 to vector<8x1024xf32>
    %47 = arith.mulf %46, %43 : vector<8x1024xf32>
    %48 = arith.select %45, %43, %47 : vector<8x1024xi1>, vector<8x1024xf32>
    %c0_26 = arith.constant 0 : index
    %c2048_27 = arith.constant 2048 : index
    %49 = vector.load %arg4[%c0_26, %c2048_27] : memref<1x4096xbf16, #tpu.memory_space<vmem>>, vector<1x1024xbf16>
    %50 = arith.extf %49 : vector<1x1024xbf16> to vector<1x1024xf32>
    %51 = vector.broadcast %50 : vector<1x1024xf32> to vector<8x1024xf32>
    %52 = arith.mulf %48, %51 : vector<8x1024xf32>
    %cst_28 = arith.constant dense<0.000000e+00> : vector<8xf32>
    %53 = vector.multi_reduction <add>, %52, %cst_28 [1] : vector<8x1024xf32> to vector<8xf32>
    %54 = vector.shape_cast %53 : vector<8xf32> to vector<8x1xf32>
    %55 = arith.addf %37, %54 : vector<8x1xf32>
    %c0_29 = arith.constant 0 : index
    %c3072 = arith.constant 3072 : index
    %56 = vector.load %arg2[%c0_29, %c3072] : memref<32x4096xbf16, #tpu.memory_space<vmem>>, vector<32x1024xbf16>
    %cst_30 = arith.constant dense<0.000000e+00> : vector<8x1024xf32>
    %57 = tpu.matmul %0, %56, %cst_30 {dimension_numbers = #tpu.dot_dimension_numbers<[1], [0], [0], [1], [0, 0, 1, 1], [], []>} : vector<8x32xbf16>, vector<32x1024xbf16>, vector<8x1024xf32> -> vector<8x1024xf32>
    %c0_31 = arith.constant 0 : index
    %c3072_32 = arith.constant 3072 : index
    %58 = vector.load %arg3[%c0_31, %c3072_32] : memref<1x4096xbf16, #tpu.memory_space<vmem>>, vector<1x1024xbf16>
    %59 = arith.extf %58 : vector<1x1024xbf16> to vector<1x1024xf32>
    %60 = vector.broadcast %59 : vector<1x1024xf32> to vector<8x1024xf32>
    %61 = arith.addf %57, %60 : vector<8x1024xf32>
    %cst_33 = arith.constant 0.000000e+00 : f32
    %62 = vector.broadcast %cst_33 : f32 to vector<8x1024xf32>
    %63 = arith.cmpf ogt, %61, %62 : vector<8x1024xf32>
    %cst_34 = arith.constant 0.00999999977 : f32
    %64 = vector.broadcast %cst_34 : f32 to vector<8x1024xf32>
    %65 = arith.mulf %64, %61 : vector<8x1024xf32>
    %66 = arith.select %63, %61, %65 : vector<8x1024xi1>, vector<8x1024xf32>
    %c0_35 = arith.constant 0 : index
    %c3072_36 = arith.constant 3072 : index
    %67 = vector.load %arg4[%c0_35, %c3072_36] : memref<1x4096xbf16, #tpu.memory_space<vmem>>, vector<1x1024xbf16>
    %68 = arith.extf %67 : vector<1x1024xbf16> to vector<1x1024xf32>
    %69 = vector.broadcast %68 : vector<1x1024xf32> to vector<8x1024xf32>
    %70 = arith.mulf %66, %69 : vector<8x1024xf32>
    %cst_37 = arith.constant dense<0.000000e+00> : vector<8xf32>
    %71 = vector.multi_reduction <add>, %70, %cst_37 [1] : vector<8x1024xf32> to vector<8xf32>
    %72 = vector.shape_cast %71 : vector<8xf32> to vector<8x1xf32>
    %73 = arith.addf %55, %72 : vector<8x1xf32>
    %c0_38 = arith.constant 0 : index
    %74 = memref.load %arg5[%c0_38] : memref<1xf32, #tpu.memory_space<smem>>
    %75 = vector.broadcast %74 : f32 to vector<8x1xf32>
    %76 = arith.addf %73, %75 : vector<8x1xf32>
    %cst_39 = arith.constant 0.000000e+00 : f32
    %77 = vector.broadcast %cst_39 : f32 to vector<8x1xf32>
    %78 = arith.subf %77, %76 : vector<8x1xf32>
    %79 = math.exp %78 : vector<8x1xf32>
    %cst_40 = arith.constant 1.000000e+00 : f32
    %80 = vector.broadcast %cst_40 : f32 to vector<8x1xf32>
    %81 = arith.addf %80, %79 : vector<8x1xf32>
    %cst_41 = arith.constant 1.000000e+00 : f32
    %82 = vector.broadcast %cst_41 : f32 to vector<8x1xf32>
    %83 = arith.divf %82, %81 : vector<8x1xf32>
    %c0_42 = arith.constant 0 : index
    %c0_43 = arith.constant 0 : index
    %84 = vector.load %arg6[%c0_42, %c0_43] : memref<8x1xf32, #tpu.memory_space<vmem>>, vector<8x1xf32>
    tpu.vector_store %arg6[%c0_42, %c0_43], %83 {strides = array<i32>} : memref<8x1xf32, #tpu.memory_space<vmem>>, vector<8x1xf32>,
    return
  }
  func.func @transform_0(%arg0: i32) -> (i32, i32) {
    %c0_i32 = arith.constant 0 : i32
    %c0_i32_0 = arith.constant 0 : i32
    return %arg0, %c0_i32 : i32, i32
  }
  func.func @transform_1(%arg0: i32) -> (i32, i32) {
    %c0_i32 = arith.constant 0 : i32
    %c0_i32_0 = arith.constant 0 : i32
    %c0_i32_1 = arith.constant 0 : i32
    return %c0_i32, %c0_i32_0 : i32, i32
  }
  func.func @transform_2(%arg0: i32) -> (i32, i32) {
    %c0_i32 = arith.constant 0 : i32
    %c0_i32_0 = arith.constant 0 : i32
    %c0_i32_1 = arith.constant 0 : i32
    return %c0_i32, %c0_i32_0 : i32, i32
  }
  func.func @transform_3(%arg0: i32) -> (i32, i32) {
    %c0_i32 = arith.constant 0 : i32
    %c0_i32_0 = arith.constant 0 : i32
    %c0_i32_1 = arith.constant 0 : i32
    return %c0_i32, %c0_i32_0 : i32, i32
  }
  func.func @transform_4(%arg0: i32) -> i32 {
    %c0_i32 = arith.constant 0 : i32
    %c0_i32_0 = arith.constant 0 : i32
    return %c0_i32 : i32
  }
  func.func @transform_5(%arg0: i32) -> (i32, i32) {
    %c0_i32 = arith.constant 0 : i32
    %c0_i32_0 = arith.constant 0 : i32
    return %arg0, %c0_i32 : i32, i32
  }
}

</mosaic_0001>

<bundles_post_ra>
// kernel: tpu_custom_call.1
= control target key start
LH: loop header
LB: loop body
LE: loop exit
PB: predicated region body
PF: predicated region fallthrough
CT: control target
= control target key end

     0   :  { %11 = vsyncpa [#allocation4], 0  ;;  %s2600_s0 = inlined_call_operand.hbm [shape: bf16[8,32], index: 0, kind: input, shape index: {}]   ;;  %s2601_s1 = inlined_call_operand.hbm [shape: bf16[32,4096], index: 1, kind: input, shape index: {}]   ;;  %s2602_s2 = inlined_call_operand.hbm [shape: bf16[1,4096], index: 2, kind: input, shape index: {}]   ;;  %s2603_s3 = inlined_call_operand.hbm [shape: bf16[1,4096], index: 3, kind: input, shape index: {}]   ;;  %s2604_s4 = inlined_call_operand.<no memory space> [shape: f32[1], index: 4, kind: input, shape index: {}]   ;;  %s2605_s5 = inlined_call_operand.vmem [shape: f32[8,1], index: 5, kind: output, shape index: {}]  }
   0x1   :  { %12 = vsyncpa [#allocation6], 0 }
   0x2   :  { %13 = vsyncpa [#allocation9], 0  ;;  %s2103_s18 = smov [#allocation5]   ;;  %s2009_s22 = scalar_lea.hbm %s2601_s1, 8192 }
   0x3   :  { %s29_s19 = sshll.u32 %s2103_s18, 4  ;;  %p2010_p0 = scmp.ne.s32.totalorder %s2601_s1, %s2009_s22  ;;  %s30_s19 = int_to_ptr.vmem [resolvable:$true] %s29_s19 }
   0x4   :  { %p2013_p1 = scmp.lt.u32.totalorder %s2009_s22, %s2601_s1 }
   0x6   :  { %p2015_p2 = pnand %p2013_p1, %p2010_p0 }
   0x8   :  { %2018 = shalt.err (!%p2015_p2)
}
   0x9   :  { %s2019_s27 = scalar_lea.vmem %s30_s19, 8192  ;;  %p2024_p4 = scmp.lt.s32.totalorder %s30_s19, %s30_s19 }
   0xa   :  { %p2020_p3 = scmp.ne.s32.totalorder %s30_s19, %s2019_s27  ;;  %p2025_p5 = scmp.lt.s32.totalorder %s2019_s27, %s2019_s27 }
   0xc   :  { %p2026_p6 = por %p2025_p5, %p2024_p4 }
   0xe   :  { %p2027_p7 = pnand %p2026_p6, %p2020_p3 }
  0x10   :  { %2030 = shalt.err (!%p2027_p7)
}
  0x11   :  { %s2104_s28 = smov 2048   ;;  %s2105_s29 = smov 128  }
  0x12   :  { %35 = dma.hbm_to_vmem [thread:$0]  %s2601_s1, 8192, %s30_s19, [#allocation6], %s2104_s28, %s2104_s28, %s2105_s29  }
  0x13   :  { %s2106_s7 = smov [#allocation3]   ;;  %s2107_s9 = smov [#allocation7]  }
  0x14   :  { %s20_s8 = sshll.u32 %s2106_s7, 4  ;;  %s42_s10 = sshll.u32 %s2107_s9, 4  ;;  %s21_s8 = int_to_ptr.vmem [resolvable:$true] %s20_s8  ;;  %s43_s10 = int_to_ptr.vmem [resolvable:$true] %s42_s10 }
  0x15   :  { %s2031_s13 = scalar_lea.hbm %s2600_s0, 64 }
  0x16   :  { %p2032_p8 = scmp.ne.s32.totalorder %s2600_s0, %s2031_s13  ;;  %p2035_p9 = scmp.lt.u32.totalorder %s2031_s13, %s2600_s0 }
  0x18   :  { %p2037_p10 = pnand %p2035_p9, %p2032_p8 }
  0x1a   :  { %2040 = shalt.err (!%p2037_p10)
}
  0x1b   :  { %s2041_s1 = scalar_lea.vmem %s21_s8, 64  ;;  %p2046_p12 = scmp.lt.s32.totalorder %s21_s8, %s21_s8 }
  0x1c   :  { %p2042_p11 = scmp.ne.s32.totalorder %s21_s8, %s2041_s1  ;;  %p2047_p13 = scmp.lt.s32.totalorder %s2041_s1, %s2041_s1 }
  0x1e   :  { %p2048_p0 = por %p2047_p13, %p2046_p12 }
  0x20   :  { %p2049_p1 = pnand %p2048_p0, %p2042_p11 }
  0x22   :  { %2052 = shalt.err (!%p2049_p1)
}
  0x23   :  { %23 = dma.hbm_to_vmem [thread:$0]  %s2600_s0, 64, %s21_s8, [#allocation4]  }
  0x24   :  { %s2053_s22 = scalar_lea.hbm %s2602_s2, 512 }
  0x25   :  { %p2054_p2 = scmp.ne.s32.totalorder %s2602_s2, %s2053_s22  ;;  %p2057_p3 = scmp.lt.u32.totalorder %s2053_s22, %s2602_s2 }
  0x27   :  { %p2059_p4 = pnand %p2057_p3, %p2054_p2 }
  0x29   :  { %2062 = shalt.err (!%p2059_p4)
}
  0x2a   :  { %s2063_s27 = scalar_lea.vmem %s43_s10, 512  ;;  %p2068_p6 = scmp.lt.s32.totalorder %s43_s10, %s43_s10 }
  0x2b   :  { %p2064_p5 = scmp.ne.s32.totalorder %s43_s10, %s2063_s27  ;;  %p2069_p7 = scmp.lt.s32.totalorder %s2063_s27, %s2063_s27 }
  0x2d   :  { %p2070_p8 = por %p2069_p7, %p2068_p6 }
  0x2f   :  { %p2071_p9 = pnand %p2070_p8, %p2064_p5 }
  0x31   :  { %2074 = shalt.err (!%p2071_p9)
}
  0x32   :  { %45 = dma.hbm_to_vmem [thread:$0]  %s2602_s2, 512, %s43_s10, [#allocation6]  }
  0x33   :  { %s2108_s29 = smov [#allocation8]   ;;  %s2075_s8 = scalar_lea.hbm %s2603_s3, 512 }
  0x34   :  { %s52_s30 = sshll.u32 %s2108_s29, 4  ;;  %p2076_p10 = scmp.ne.s32.totalorder %s2603_s3, %s2075_s8  ;;  %s53_s30 = int_to_ptr.vmem [resolvable:$true] %s52_s30 }
  0x35   :  { %p2079_p11 = scmp.lt.u32.totalorder %s2075_s8, %s2603_s3 }
  0x37   :  { %p2081_p12 = pnand %p2079_p11, %p2076_p10 }
  0x39   :  { %2084 = shalt.err (!%p2081_p12)
}
  0x3a   :  { %s2085_s14 = scalar_lea.vmem %s53_s30, 512  ;;  %p2090_p0 = scmp.lt.s32.totalorder %s53_s30, %s53_s30 }
  0x3b   :  { %p2086_p13 = scmp.ne.s32.totalorder %s53_s30, %s2085_s14  ;;  %p2091_p1 = scmp.lt.s32.totalorder %s2085_s14, %s2085_s14 }
  0x3d   :  { %p2092_p2 = por %p2091_p1, %p2090_p0 }
  0x3f   :  { %p2093_p3 = pnand %p2092_p2, %p2086_p13 }
  0x41   :  { %2096 = shalt.err (!%p2093_p3)
}
  0x42   :  { %55 = dma.hbm_to_vmem [thread:$0]  %s2603_s3, 512, %s53_s30, [#allocation9]  }
  0x43   :  { %2097 = dma.done.wait [#allocation4], 64  }
  0x44   :  { %2098 = vsyncadd [#allocation4], 4294967232 }
  0x45   :  { %2099 = dma.done.wait [#allocation6], 8704  }
  0x46   :  { %2100 = vsyncadd [#allocation6], 4294958592 }
  0x47   :  { %2101 = dma.done.wait [#allocation9], 512  }
  0x48   :  { %2102 = vsyncadd [#allocation9], 4294966784  ;;  %v2109_v0 = vmov 0   ;;  %v72_v1 = vld [vmem:[#allocation5] sm:$0xff]  ;;  %v73_v3 = vld [vmem:[#allocation5 + $0x8] sm:$0xff]  ;;  %vm245_vm0 = vcmask 261120  }
  0x49   :  { %281 = vmatprep.mubr.bf16.mxu0 %v2109_v0  ;;  %322 = vmatprep.mubr.bf16.mxu1 %v2109_v0  ;;  %v76_v2 = vld [vmem:[#allocation5 + $0x80] sm:$0xff]  ;;  %v77_v6 = vld [vmem:[#allocation5 + $0x88] sm:$0xff]  ;;  %v74_v15 = vld [vmem:[#allocation5 + $0x10] sm:$0xff] }
  0x4a   :  { %v1919_v4 = vcombine.high %v72_v1, %v76_v2  ;;  %v1918_v5 = vcombine.low %v72_v1, %v76_v2  ;;  %v80_v7 = vld [vmem:[#allocation5 + $0x100] sm:$0xff]  ;;  %v1921_v9 = vcombine.high %v73_v3, %v77_v6  ;;  %v1920_v10 = vcombine.low %v73_v3, %v77_v6  ;;  %v81_v12 = vld [vmem:[#allocation5 + $0x108] sm:$0xff]  ;;  %v78_v16 = vld [vmem:[#allocation5 + $0x90] sm:$0xff] }
  0x4b   :  { %v84_v8 = vld [vmem:[#allocation5 + $0x180] sm:$0xff]  ;;  %v85_v13 = vld [vmem:[#allocation5 + $0x188] sm:$0xff]  ;;  %v75_v17 = vld [vmem:[#allocation5 + $0x18] sm:$0xff]  ;;  %v1923_v21 = vcombine.high %v74_v15, %v78_v16  ;;  %v1922_v28 = vcombine.low %v74_v15, %v78_v16 }
  0x4c   :  { %v1927_v11 = vcombine.high %v80_v7, %v84_v8  ;;  %249 = vmatprep.subr.bf16.mxu0 %v1919_v4  ;;  %v1929_v14 = vcombine.high %v81_v12, %v85_v13  ;;  %290 = vmatprep.subr.bf16.mxu1 %v1921_v9  ;;  %v1926_v18 = vcombine.low %v80_v7, %v84_v8  ;;  %v79_v19 = vld [vmem:[#allocation5 + $0x98] sm:$0xff]  ;;  %v82_v23 = vld [vmem:[#allocation5 + $0x110] sm:$0xff]  ;;  %v532_v32 = vld [vmem:[#allocation5 + $0x20] sm:$0xff] }
  0x4d   :  { %250 = vmatpush1.bf16.msra.mxu0 %v1918_v5  ;;  %291 = vmatpush1.bf16.msra.mxu1 %v1920_v10  ;;  %v1928_v20 = vcombine.low %v81_v12, %v85_v13  ;;  %v1925_v22 = vcombine.high %v75_v17, %v79_v19  ;;  %v86_v24 = vld [vmem:[#allocation5 + $0x190] sm:$0xff]  ;;  %v83_v25 = vld [vmem:[#allocation5 + $0x118] sm:$0xff]  ;;  %v1924_v29 = vcombine.low %v75_v17, %v79_v19  ;;  %v536_v33 = vld [vmem:[#allocation5 + $0xa0] sm:$0xff] }
  0x4e   :  { %251 = vmatprep.subr.bf16.mxu0 %v1927_v11  ;;  %292 = vmatprep.subr.bf16.mxu1 %v1929_v14  ;;  %v87_v26 = vld [vmem:[#allocation5 + $0x198] sm:$0xff]  ;;  %v1931_v30 = vcombine.high %v82_v23, %v86_v24  ;;  %v533_v34 = vld [vmem:[#allocation5 + $0x28] sm:$0xff]  ;;  %v1930_v36 = vcombine.low %v82_v23, %v86_v24  ;;  %v1939_v38 = vcombine.high %v532_v32, %v536_v33  ;;  %v540_v40 = vld [vmem:[#allocation5 + $0x120] sm:$0xff] }
  0x4f   :  { %v2190_v27 = vld [vmem:[#allocation3] sm:$0xf]  ;;  %v1933_v31 = vcombine.high %v83_v25, %v87_v26  ;;  %v537_v35 = vld [vmem:[#allocation5 + $0xa8] sm:$0xff]  ;;  %v1932_v37 = vcombine.low %v83_v25, %v87_v26  ;;  %v544_v41 = vld [vmem:[#allocation5 + $0x1a0] sm:$0xff]  ;;  %v1938_v44 = vcombine.low %v532_v32, %v536_v33 }
  0x50   :  { %v1941_v39 = vcombine.high %v533_v34, %v537_v35  ;;  %v541_v42 = vld [vmem:[#allocation5 + $0x128] sm:$0xff]  ;;  %v1940_v45 = vcombine.low %v533_v34, %v537_v35  ;;  %v1947_v46 = vcombine.high %v540_v40, %v544_v41  ;;  %v534_v48 = vld [vmem:[#allocation5 + $0x30] sm:$0xff]  ;;  %v535_v50 = vld [vmem:[#allocation5 + $0x38] sm:$0xff]  ;;  %v1946_v52 = vcombine.low %v540_v40, %v544_v41 }
  0x51   :  { %252 = vmatpush1.bf16.msra.mxu0 %v1926_v18  ;;  %293 = vmatpush1.bf16.msra.mxu1 %v1928_v20  ;;  %v545_v43 = vld [vmem:[#allocation5 + $0x1a8] sm:$0xff]  ;;  %v538_v49 = vld [vmem:[#allocation5 + $0xb0] sm:$0xff]  ;;  %v539_v51 = vld [vmem:[#allocation5 + $0xb8] sm:$0xff] }
  0x52   :  { %331 = vmatprep.subr.bf16.mxu0 %v1923_v21  ;;  %372 = vmatprep.subr.bf16.mxu1 %v1925_v22  ;;  %v1949_v47 = vcombine.high %v541_v42, %v545_v43  ;;  %v1948_v53 = vcombine.low %v541_v42, %v545_v43  ;;  %v1943_v54 = vcombine.high %v534_v48, %v538_v49  ;;  %v542_v56 = vld [vmem:[#allocation5 + $0x130] sm:$0xff]  ;;  %v543_v58 = vld [vmem:[#allocation5 + $0x138] sm:$0xff]  ;;  %v988_v1 = vld [vmem:[#allocation5 + $0x40] sm:$0xff] }
  0x53   :  { %v1945_v55 = vcombine.high %v535_v50, %v539_v51  ;;  %v546_v57 = vld [vmem:[#allocation5 + $0x1b0] sm:$0xff]  ;;  %v547_v59 = vld [vmem:[#allocation5 + $0x1b8] sm:$0xff]  ;;  %v1942_v60 = vcombine.low %v534_v48, %v538_v49  ;;  %v1944_v61 = vcombine.low %v535_v50, %v539_v51  ;;  %v992_v2 = vld [vmem:[#allocation5 + $0xc0] sm:$0xff] }
  0x54   :  { %1934 = vmatmul.mubr.msk.bf16.vlgmr.msra.gmra.mrb[0].mxu0 %vm245_vm0, %v2190_v27  ;;  %1935 = vmatmul.mubr.msk.bf16.vlgmr.msra.gmra.mrb[0].mxu1 %vm245_vm0, %v2190_v27  ;;  %v1951_v62 = vcombine.high %v542_v56, %v546_v57  ;;  %v1953_v63 = vcombine.high %v543_v58, %v547_v59  ;;  %v989_v3 = vld [vmem:[#allocation5 + $0x48] sm:$0xff]  ;;  %v1950_v5 = vcombine.low %v542_v56, %v546_v57  ;;  %v996_v9 = vld [vmem:[#allocation5 + $0x140] sm:$0xff]  ;;  %v990_v17 = vld [vmem:[#allocation5 + $0x50] sm:$0xff] }
  0x55   :  { %332 = vmatpush1.bf16.msra.mxu0 %v1922_v28  ;;  %373 = vmatpush1.bf16.msra.mxu1 %v1924_v29  ;;  %v993_v4 = vld [vmem:[#allocation5 + $0xc8] sm:$0xff]  ;;  %v1952_v6 = vcombine.low %v543_v58, %v547_v59  ;;  %v1959_v7 = vcombine.high %v988_v1, %v992_v2  ;;  %v1000_v10 = vld [vmem:[#allocation5 + $0x1c0] sm:$0xff]  ;;  %v1958_v13 = vcombine.low %v988_v1, %v992_v2  ;;  %v994_v18 = vld [vmem:[#allocation5 + $0xd0] sm:$0xff] }
  0x56   :  { %333 = vmatprep.subr.bf16.mxu0 %v1931_v30  ;;  %374 = vmatprep.subr.bf16.mxu1 %v1933_v31  ;;  %v1961_v8 = vcombine.high %v989_v3, %v993_v4  ;;  %v997_v11 = vld [vmem:[#allocation5 + $0x148] sm:$0xff]  ;;  %v1960_v14 = vcombine.low %v989_v3, %v993_v4  ;;  %v1967_v15 = vcombine.high %v996_v9, %v1000_v10  ;;  %v991_v19 = vld [vmem:[#allocation5 + $0x58] sm:$0xff]  ;;  %v998_v25 = vld [vmem:[#allocation5 + $0x150] sm:$0xff] }
  0x57   :  { %363 = vmatprep.mubr.bf16.mxu0 %v2109_v0  ;;  %404 = vmatprep.mubr.bf16.mxu1 %v2109_v0  ;;  %v1001_v12 = vld [vmem:[#allocation5 + $0x1c8] sm:$0xff]  ;;  %v995_v20 = vld [vmem:[#allocation5 + $0xd8] sm:$0xff]  ;;  %v1966_v21 = vcombine.low %v996_v9, %v1000_v10  ;;  %v1963_v23 = vcombine.high %v990_v17, %v994_v18  ;;  %v1002_v26 = vld [vmem:[#allocation5 + $0x1d0] sm:$0xff]  ;;  %v1962_v30 = vcombine.low %v990_v17, %v994_v18 }
  0x58   :  { %v1969_v16 = vcombine.high %v997_v11, %v1001_v12  ;;  %v1968_v22 = vcombine.low %v997_v11, %v1001_v12  ;;  %v1965_v24 = vcombine.high %v991_v19, %v995_v20  ;;  %v999_v28 = vld [vmem:[#allocation5 + $0x158] sm:$0xff]  ;;  %v1964_v31 = vcombine.low %v991_v19, %v995_v20  ;;  %v1444_v34 = vld [vmem:[#allocation5 + $0x60] sm:$0xff]  ;;  %v1446_v50 = vld [vmem:[#allocation5 + $0x70] sm:$0xff] }
  0x59   :  { %334 = vmatpush1.bf16.msra.mxu0 %v1930_v36  ;;  %375 = vmatpush1.bf16.msra.mxu1 %v1932_v37  ;;  %v1003_v29 = vld [vmem:[#allocation5 + $0x1d8] sm:$0xff]  ;;  %v1971_v32 = vcombine.high %v998_v25, %v1002_v26  ;;  %v1448_v35 = vld [vmem:[#allocation5 + $0xe0] sm:$0xff]  ;;  %v1445_v36 = vld [vmem:[#allocation5 + $0x68] sm:$0xff] }
  0x5a   :  { %705 = vmatprep.subr.bf16.mxu0 %v1939_v38  ;;  %746 = vmatprep.subr.bf16.mxu1 %v1941_v39  ;;  %v1973_v33 = vcombine.high %v999_v28, %v1003_v29  ;;  %v1449_v37 = vld [vmem:[#allocation5 + $0xe8] sm:$0xff]  ;;  %v1970_v38 = vcombine.low %v998_v25, %v1002_v26  ;;  %v1972_v39 = vcombine.low %v999_v28, %v1003_v29  ;;  %v1452_v42 = vld [vmem:[#allocation5 + $0x160] sm:$0xff]  ;;  %v1450_v51 = vld [vmem:[#allocation5 + $0xf0] sm:$0xff] }
  0x5b   :  { %v1979_v40 = vcombine.high %v1444_v34, %v1448_v35  ;;  %v1981_v41 = vcombine.high %v1445_v36, %v1449_v37  ;;  %v1456_v43 = vld [vmem:[#allocation5 + $0x1e0] sm:$0xff]  ;;  %v1983_v56 = vcombine.high %v1446_v50, %v1450_v51  ;;  %v1454_v58 = vld [vmem:[#allocation5 + $0x170] sm:$0xff]  ;;  %v548_v18 = vld [vmem:[#allocation7 + $0x8] sm:$0xff] }
  0x5c   :  { %1936 = vmatmul.mubr.msk.bf16.vlgmr.msra.gmra.mrb[4].mxu0 %vm245_vm0, %v2190_v27  ;;  %1937 = vmatmul.mubr.msk.bf16.vlgmr.msra.gmra.mrb[4].mxu1 %vm245_vm0, %v2190_v27  ;;  %v1987_v48 = vcombine.high %v1452_v42, %v1456_v43  ;;  %v1458_v59 = vld [vmem:[#allocation5 + $0x1f0] sm:$0xff]  ;;  %v549_v25 = vunpack.c.l.bf16 %v548_v18 }
  0x5d   :  { %706 = vmatpush1.bf16.msra.mxu0 %v1938_v44  ;;  %747 = vmatpush1.bf16.msra.mxu1 %v1940_v45  ;;  %v1453_v44 = vld [vmem:[#allocation5 + $0x168] sm:$0xff]  ;;  %v1991_v1 = vcombine.high %v1454_v58, %v1458_v59  ;;  %v1990_v3 = vcombine.low %v1454_v58, %v1458_v59 }
  0x5e   :  { %707 = vmatprep.subr.bf16.mxu0 %v1947_v46  ;;  %748 = vmatprep.subr.bf16.mxu1 %v1949_v47  ;;  %v1457_v45 = vld [vmem:[#allocation5 + $0x1e8] sm:$0xff]  ;;  %v1978_v46 = vcombine.low %v1444_v34, %v1448_v35  ;;  %v1980_v47 = vcombine.low %v1445_v36, %v1449_v37 }
  0x5f   :  { %737 = vmatprep.mubr.bf16.mxu0 %v2109_v0  ;;  %778 = vmatprep.mubr.bf16.mxu1 %v2109_v0  ;;  %v1989_v49 = vcombine.high %v1453_v44, %v1457_v45  ;;  %v893_v35 = vld [vmem:[#allocation8 + $0x8] sm:$0xff] }
  0x61   :  { %708 = vmatpush1.bf16.msra.mxu0 %v1946_v52  ;;  %749 = vmatpush1.bf16.msra.mxu1 %v1948_v53  ;;  %v1447_v52 = vld [vmem:[#allocation5 + $0x78] sm:$0xff] }
  0x62   :  { %787 = vmatprep.subr.bf16.mxu0 %v1943_v54  ;;  %828 = vmatprep.subr.bf16.mxu1 %v1945_v55  ;;  %v1451_v53 = vld [vmem:[#allocation5 + $0xf8] sm:$0xff]  ;;  %v1986_v54 = vcombine.low %v1452_v42, %v1456_v43  ;;  %v1988_v55 = vcombine.low %v1453_v44, %v1457_v45  ;;  %v894_v45 = vunpack.c.l.bf16 %v893_v35 }
  0x63   :  { %v1985_v57 = vcombine.high %v1447_v52, %v1451_v53 }
  0x64   :  { %1954 = vmatmul.mubr.msk.bf16.vlgmr.msra.gmra.mrb[8].mxu0 %vm245_vm0, %v2190_v27  ;;  %1955 = vmatmul.mubr.msk.bf16.vlgmr.msra.gmra.mrb[8].mxu1 %vm245_vm0, %v2190_v27 }
  0x65   :  { %788 = vmatpush1.bf16.msra.mxu0 %v1942_v60  ;;  %829 = vmatpush1.bf16.msra.mxu1 %v1944_v61  ;;  %v1455_v60 = vld [vmem:[#allocation5 + $0x178] sm:$0xff] }
  0x66   :  { %789 = vmatprep.subr.bf16.mxu0 %v1951_v62  ;;  %830 = vmatprep.subr.bf16.mxu1 %v1953_v63  ;;  %v1459_v61 = vld [vmem:[#allocation5 + $0x1f8] sm:$0xff]  ;;  %v1982_v62 = vcombine.low %v1446_v50, %v1450_v51  ;;  %v1984_v63 = vcombine.low %v1447_v52, %v1451_v53  ;;  %v550_v52 = vunpack.c.h.bf16 %v548_v18 }
  0x67   :  { %819 = vmatprep.mubr.bf16.mxu0 %v2109_v0  ;;  %860 = vmatprep.mubr.bf16.mxu1 %v2109_v0  ;;  %v1993_v2 = vcombine.high %v1455_v60, %v1459_v61  ;;  %v1992_v4 = vcombine.low %v1455_v60, %v1459_v61 }
  0x69   :  { %790 = vmatpush1.bf16.msra.mxu0 %v1950_v5  ;;  %831 = vmatpush1.bf16.msra.mxu1 %v1952_v6  ;;  %v93_v5 = vlaneseq }
  0x6a   :  { %1161 = vmatprep.subr.bf16.mxu0 %v1959_v7  ;;  %1202 = vmatprep.subr.bf16.mxu1 %v1961_v8  ;;  %v88_v7 = vld [vmem:[#allocation7] sm:$0xff] }
  0x6b   :  { %v94_v6 = vshrl.u32 %v93_v5, 7  ;;  %v437_v8 = vld [vmem:[#allocation8] sm:$0xff]  ;;  %v89_v9 = vunpack.c.l.bf16 %v88_v7  ;;  %v90_v17 = vunpack.c.h.bf16 %v88_v7 }
  0x6c   :  { %1956 = vmatmul.mubr.msk.bf16.vlgmr.msra.gmra.mrb[12].mxu0 %vm245_vm0, %v2190_v27  ;;  %1957 = vmatmul.mubr.msk.bf16.vlgmr.msra.gmra.mrb[12].mxu1 %vm245_vm0, %v2190_v27 }
  0x6d   :  { %1162 = vmatpush1.bf16.msra.mxu0 %v1958_v13  ;;  %1203 = vmatpush1.bf16.msra.mxu1 %v1960_v14  ;;  %v2238_v10 = vsub.s32 0, %v94_v6  ;;  %v2240_v11 = vsub.s32 2, %v94_v6  ;;  %v2242_v12 = vsub.s32 4, %v94_v6  ;;  %v438_v13 = vunpack.c.l.bf16 %v437_v8 }
  0x6e   :  { %1163 = vmatprep.subr.bf16.mxu0 %v1967_v15  ;;  %1204 = vmatprep.subr.bf16.mxu1 %v1969_v16 }
  0x6f   :  { %1193 = vmatprep.mubr.bf16.mxu0 %v2109_v0  ;;  %1234 = vmatprep.mubr.bf16.mxu1 %v2109_v0  ;;  %v96_v14 = vrot.slane %v89_v9, %v2238_v10  ;;  %v100_v15 = vrot.slane %v89_v9, %v2240_v11  ;;  %v445_v19 = vrot.slane %v438_v13, %v2238_v10 }
  0x70   :  { %v449_v20 = vrot.slane %v438_v13, %v2240_v11  ;;  %v120_v34 = vrot.slane %v90_v17, %v2242_v12  ;;  %v901_v61 = vrot.slane %v894_v45, %v2238_v10  ;;  %v572_v5 = vrot.slane %v550_v52, %v2238_v10 }
  0x71   :  { %1164 = vmatpush1.bf16.msra.mxu0 %v1966_v21  ;;  %1205 = vmatpush1.bf16.msra.mxu1 %v1968_v22  ;;  %v453_v21 = vrot.slane %v438_v13, %v2242_v12  ;;  %v439_v22 = vunpack.c.h.bf16 %v437_v8  ;;  %v2258_v26 = vrot.slane %v100_v15, %v2238_v10  ;;  %v576_v7 = vrot.slane %v550_v52, %v2240_v11 }
  0x72   :  { %1243 = vmatprep.subr.bf16.mxu0 %v1963_v23  ;;  %1284 = vmatprep.subr.bf16.mxu1 %v1965_v24  ;;  %v2254_v23 = vrot.slane %v96_v14, %v2238_v10  ;;  %v2298_v50 = vrot.slane %v120_v34, %v2238_v10  ;;  %v580_v8 = vrot.slane %v550_v52, %v2242_v12 }
  0x73   :  { %v2276_v36 = vrot.slane %v453_v21, %v2238_v10  ;;  %v461_v37 = vrot.slane %v439_v22, %v2238_v10  ;;  %v469_v42 = vrot.slane %v439_v22, %v2242_v12 }
  0x74   :  { %1974 = vmatmul.mubr.msk.bf16.vlgmr.msra.gmra.mrb[16].mxu0 %vm245_vm0, %v2190_v27  ;;  %1975 = vmatmul.mubr.msk.bf16.vlgmr.msra.gmra.mrb[16].mxu1 %vm245_vm0, %v2190_v27  ;;  %v2371_v34 = vrot.slane %v580_v8, %v2238_v10 }
  0x75   :  { %1244 = vmatpush1.bf16.msra.mxu0 %v1962_v30  ;;  %1285 = vmatpush1.bf16.msra.mxu1 %v1964_v31  ;;  %v112_v30 = vrot.slane %v90_v17, %v2238_v10  ;;  %v2268_v31 = vrot.slane %v445_v19, %v2238_v10  ;;  %v2302_v53 = vrot.slane %v461_v37, %v2238_v10 }
  0x76   :  { %1245 = vmatprep.subr.bf16.mxu0 %v1971_v32  ;;  %1286 = vmatprep.subr.bf16.mxu1 %v1973_v33  ;;  %v2271_v32 = vrot.slane %v449_v20, %v2238_v10  ;;  %v116_v33 = vrot.slane %v90_v17, %v2240_v11  ;;  %v2314_v58 = vrot.slane %v469_v42, %v2238_v10 }
  0x77   :  { %1275 = vmatprep.mubr.bf16.mxu0 %v2109_v0  ;;  %1316 = vmatprep.mubr.bf16.mxu1 %v2109_v0  ;;  %v2288_v44 = vrot.slane %v112_v30, %v2238_v10 }
  0x79   :  { %1246 = vmatpush1.bf16.msra.mxu0 %v1970_v38  ;;  %1287 = vmatpush1.bf16.msra.mxu1 %v1972_v39  ;;  %v465_v39 = vrot.slane %v439_v22, %v2240_v11 }
  0x7a   :  { %1617 = vmatprep.subr.bf16.mxu0 %v1979_v40  ;;  %1658 = vmatprep.subr.bf16.mxu1 %v1981_v41  ;;  %v556_v41 = vrot.slane %v549_v25, %v2238_v10 }
  0x7c   :  { %1976 = vmatmul.mubr.msk.bf16.vlgmr.msra.gmra.mrb[20].mxu0 %vm245_vm0, %v2190_v27  ;;  %1977 = vmatmul.mubr.msk.bf16.vlgmr.msra.gmra.mrb[20].mxu1 %vm245_vm0, %v2190_v27 }
  0x7d   :  { %1618 = vmatpush1.bf16.msra.mxu0 %v1978_v46  ;;  %1659 = vmatpush1.bf16.msra.mxu1 %v1980_v47  ;;  %v560_v46 = vrot.slane %v549_v25, %v2240_v11  ;;  %v564_v47 = vrot.slane %v549_v25, %v2242_v12 }
  0x7e   :  { %1619 = vmatprep.subr.bf16.mxu0 %v1987_v48  ;;  %1660 = vmatprep.subr.bf16.mxu1 %v1989_v49  ;;  %v2292_v48 = vld [vmem:[#allocation7 + $0x10] sm:$0xff]  ;;  %v2295_v49 = vrot.slane %v116_v33, %v2238_v10  ;;  %v2368_v33 = vrot.slane %v576_v7, %v2238_v10 }
  0x7f   :  { %1649 = vmatprep.mubr.bf16.mxu0 %v2109_v0  ;;  %1690 = vmatprep.mubr.bf16.mxu1 %v2109_v0  ;;  %v1005_v60 = vunpack.c.l.bf16 %v2292_v48 }
  0x81   :  { %1620 = vmatpush1.bf16.msra.mxu0 %v1986_v54  ;;  %1661 = vmatpush1.bf16.msra.mxu1 %v1988_v55  ;;  %v895_v55 = vunpack.c.h.bf16 %v893_v35  ;;  %v1012_v15 = vrot.slane %v1005_v60, %v2238_v10  ;;  %v1016_v19 = vrot.slane %v1005_v60, %v2240_v11  ;;  %v1020_v20 = vrot.slane %v1005_v60, %v2242_v12 }
  0x82   :  { %1699 = vmatprep.subr.bf16.mxu0 %v1983_v56  ;;  %1740 = vmatprep.subr.bf16.mxu1 %v1985_v57  ;;  %v2308_v56 = vrot.slane %v465_v39, %v2238_v10  ;;  %v2311_v57 = vrot.slane %v556_v41, %v2238_v10 }
  0x83   :  { %v921_v14 = vrot.slane %v895_v55, %v2240_v11  ;;  %v2380_v39 = vrot.slane %v1012_v15, %v2238_v10 }
  0x84   :  { %1994 = vmatmul.mubr.msk.bf16.vlgmr.msra.gmra.mrb[24].mxu0 %vm245_vm0, %v2190_v27  ;;  %1995 = vmatmul.mubr.msk.bf16.vlgmr.msra.gmra.mrb[24].mxu1 %vm245_vm0, %v2190_v27 }
  0x85   :  { %1700 = vmatpush1.bf16.msra.mxu0 %v1982_v62  ;;  %1741 = vmatpush1.bf16.msra.mxu1 %v1984_v63  ;;  %v2322_v62 = vrot.slane %v560_v46, %v2238_v10  ;;  %v905_v63 = vrot.slane %v894_v45, %v2240_v11 }
  0x86   :  { %1701 = vmatprep.subr.bf16.mxu0 %v1991_v1  ;;  %1742 = vmatprep.subr.bf16.mxu1 %v1993_v2  ;;  %v2326_v1 = vrot.slane %v564_v47, %v2238_v10  ;;  %v909_v2 = vrot.slane %v894_v45, %v2242_v12  ;;  %v2390_v47 = vrot.slane %v1016_v19, %v2238_v10 }
  0x87   :  { %1731 = vmatprep.mubr.bf16.mxu0 %v2109_v0  ;;  %1772 = vmatprep.mubr.bf16.mxu1 %v2109_v0  ;;  %v2244_v0 = vsub.s32 6, %v94_v6  ;;  %v917_v6 = vrot.slane %v895_v55, %v2238_v10  ;;  %v2348_v18 = vrot.slane %v905_v63, %v2238_v10 }
  0x88   :  { %v2353_v21 = vrot.slane %v909_v2, %v2238_v10 }
  0x89   :  { %1702 = vmatpush1.bf16.msra.mxu0 %v1990_v3  ;;  %1743 = vmatpush1.bf16.msra.mxu1 %v1992_v4  ;;  %v108_v16 = vrot.slane %v89_v9, %v2244_v0  ;;  %v457_v24 = vrot.slane %v438_v13, %v2244_v0  ;;  %v124_v38 = vrot.slane %v90_v17, %v2244_v0  ;;  %v2338_v13 = vld [vmem:[#allocation8 + $0x10] sm:$0xff] }
  0x8a   :  { %v473_v43 = vrot.slane %v439_v22, %v2244_v0  ;;  %v568_v51 = vrot.slane %v549_v25, %v2244_v0  ;;  %v913_v4 = vrot.slane %v894_v45, %v2244_v0  ;;  %v2345_v17 = vrot.slane %v901_v61, %v2238_v10 }
  0x8b   :  { %v2264_v29 = vrot.slane %v108_v16, %v2238_v10  ;;  %v2282_v40 = vrot.slane %v457_v24, %v2238_v10  ;;  %v2305_v54 = vrot.slane %v124_v38, %v2238_v10  ;;  %v929_v16 = vrot.slane %v895_v55, %v2244_v0 }
  0x8c   :  { %1996 = vmatmul.mubr.msk.bf16.vlgmr.msra.gmra.mrb[28].mxu0 %vm245_vm0, %v2190_v27  ;;  %1997 = vmatmul.mubr.msk.bf16.vlgmr.msra.gmra.mrb[28].mxu1 %vm245_vm0, %v2190_v27  ;;  %v104_v27 = vrot.slane %v89_v9, %v2242_v12  ;;  %v2317_v59 = vrot.slane %v473_v43, %v2238_v10  ;;  %v2330_v3 = vrot.slane %v568_v51, %v2238_v10  ;;  %v2362_v25 = vunpack.c.l.bf16 %v2338_v13 }
  0x8d   :  { %v584_v9 = vrot.slane %v550_v52, %v2244_v0  ;;  %v2356_v22 = vrot.slane %v913_v4, %v2238_v10  ;;  %v2359_v24 = vrot.slane %v572_v5, %v2238_v10  ;;  %v2365_v30 = vrot.slane %v917_v6, %v2238_v10 }
  0x8e   :  { %v2261_v28 = vrot.slane %v104_v27, %v2238_v10  ;;  %v925_v27 = vrot.slane %v895_v55, %v2242_v12  ;;  %v2377_v38 = vrot.slane %v921_v14, %v2238_v10  ;;  %v2386_v42 = vrot.slane %v929_v16, %v2238_v10 }
  0x8f   :  { %v2374_v35 = vrot.slane %v584_v9, %v2238_v10  ;;  %v2393_v51 = vrot.slane %v1020_v20, %v2238_v10  ;;  %v1024_v52 = vrot.slane %v1005_v60, %v2244_v0  ;;  %v1357_v4 = vrot.slane %v2362_v25, %v2238_v10 }
  0x90   :  { %v2383_v41 = vrot.slane %v925_v27, %v2238_v10  ;;  %v2404_v60 = vunpack.c.h.bf16 %v2292_v48 }
  0x91   :  { %v2407_v27 = vrot.slane %v1024_v52, %v2238_v10 }
  0x92   :  { %v1028_v52 = vrot.slane %v2404_v60, %v2238_v10 }
 0x127   :  { %v283_v37 = vpop.f32.mrb[0].mxu0  ;;  %v324_v46 = vpop.f32.mrb[0].mxu1 }
 0x128   :  { %v284_v43 = vadd.f32 %v283_v37, %v2254_v23  ;;  %v285_v45 = vpop.f32.mrb[1].mxu0  ;;  %v325_v63 = vadd.f32 %v324_v46, %v2261_v28  ;;  %v326_v2 = vpop.f32.mrb[1].mxu1  ;;  %v1361_v23 = vrot.slane %v2362_v25, %v2240_v11 }
 0x129   :  { %v286_v55 = vadd.f32 %v285_v45, %v2258_v26  ;;  %v287_v61 = vpop.f32.mrb[2].mxu0  ;;  %v327_v7 = vadd.f32 %v326_v2, %v2264_v29  ;;  %v328_v8 = vpop.f32.mrb[2].mxu1  ;;  %v2411_v29 = vrot.slane %v1357_v4, %v2238_v10  ;;  %v1036_v4 = vrot.slane %v2404_v60, %v2242_v12 }
 0x12a   :  { %vm413_vm1 = vcmp.gt.f32.partialorder %v284_v43, 0.0  ;;  %v421_v5 = vmul.f32 0.01, %v284_v43  ;;  %v288_v6 = vpop.f32.mrb[3].mxu0  ;;  %vm415_vm3 = vcmp.gt.f32.partialorder %v325_v63, 0.0  ;;  %v329_v15 = vpop.f32.mrb[3].mxu1  ;;  %v2418_v61 = vrot.slane %v1361_v23, %v2238_v10 }
 0x12b   :  { %vm414_vm2 = vcmp.gt.f32.partialorder %v286_v55, 0.0  ;;  %v422_v26 = vmul.f32 0.01, %v286_v55  ;;  %v423_v28 = vmul.f32 0.01, %v325_v63  ;;  %vm416_vm4 = vcmp.gt.f32.partialorder %v327_v7, 0.0 }
 0x12c   :  { %v429_v9 = vsel %vm413_vm1, %v284_v43, %v421_v5  ;;  %v424_v14 = vmul.f32 0.01, %v327_v7  ;;  %v1365_v43 = vrot.slane %v2362_v25, %v2242_v12  ;;  %v1040_v23 = vrot.slane %v2404_v60, %v2244_v0 }
 0x12d   :  { %v514_v16 = vmul.f32 %v2268_v31, %v429_v9  ;;  %v430_v19 = vsel %vm414_vm2, %v286_v55, %v422_v26  ;;  %v431_v20 = vsel %vm415_vm3, %v325_v63, %v423_v28  ;;  %v1369_v31 = vrot.slane %v2362_v25, %v2244_v0 }
 0x12e   :  { %v515_v48 = vmul.f32 %v2271_v32, %v430_v19  ;;  %v516_v37 = vmul.f32 %v2276_v36, %v431_v20  ;;  %v432_v45 = vsel %vm416_vm4, %v327_v7, %v424_v14  ;;  %v1032_v55 = vrot.slane %v2404_v60, %v2240_v11 }
 0x12f   :  { %v365_v46 = vpop.f32.mrb[4].mxu0  ;;  %v406_v2 = vpop.f32.mrb[4].mxu1  ;;  %v517_v5 = vmul.f32 %v2282_v40, %v432_v45  ;;  %v2435_v26 = vunpack.c.h.bf16 %v2338_v13 }
 0x130   :  { %v522_v32 = vadd.f32 %v515_v48, %v514_v16  ;;  %v366_v36 = vadd.f32 %v365_v46, %v2288_v44  ;;  %v367_v63 = vpop.f32.mrb[5].mxu0  ;;  %v407_v7 = vadd.f32 %v406_v2, %v2298_v50  ;;  %v408_v8 = vpop.f32.mrb[5].mxu1  ;;  %v2440_v48 = vrot.slane %v1365_v43, %v2238_v10 }
 0x131   :  { %v368_v25 = vadd.f32 %v367_v63, %v2295_v49  ;;  %v369_v6 = vpop.f32.mrb[6].mxu0  ;;  %v409_v14 = vadd.f32 %v408_v8, %v2305_v54  ;;  %v410_v15 = vpop.f32.mrb[6].mxu1  ;;  %v2445_v54 = vld [vmem:[#allocation7 + $0x18] sm:$0xff]  ;;  %v2455_v43 = vrot.slane %v1036_v4, %v2238_v10 }
 0x132   :  { %v523_v44 = vadd.f32 %v522_v32, %v516_v37  ;;  %vm417_vm5 = vcmp.gt.f32.partialorder %v366_v36, 0.0  ;;  %v425_v28 = vmul.f32 0.01, %v366_v36  ;;  %v370_v9 = vpop.f32.mrb[7].mxu0  ;;  %vm419_vm7 = vcmp.gt.f32.partialorder %v407_v7, 0.0  ;;  %v411_v19 = vpop.f32.mrb[7].mxu1 }
 0x133   :  { %vm418_vm6 = vcmp.gt.f32.partialorder %v368_v25, 0.0  ;;  %v426_v60 = vmul.f32 0.01, %v368_v25  ;;  %v427_v40 = vmul.f32 0.01, %v407_v7  ;;  %vm420_vm8 = vcmp.gt.f32.partialorder %v409_v14, 0.0 }
 0x134   :  { %v433_v16 = vsel %vm417_vm5, %v366_v36, %v425_v28  ;;  %v428_v49 = vmul.f32 0.01, %v409_v14  ;;  %v524_v50 = vadd.f32 %v523_v44, %v517_v5  ;;  %v2443_v37 = vrot.slane %v1369_v31, %v2238_v10 }
 0x135   :  { %v518_v20 = vmul.f32 %v2302_v53, %v433_v16  ;;  %v434_v13 = vsel %vm418_vm6, %v368_v25, %v426_v60  ;;  %v435_v45 = vsel %vm419_vm7, %v407_v7, %v427_v40  ;;  %v2449_v32 = vrot.slane %v1028_v52, %v2238_v10 }
 0x136   :  { %v519_v46 = vmul.f32 %v2308_v56, %v434_v13  ;;  %v2452_v36 = vrot.slane %v1032_v55, %v2238_v10  ;;  %v436_v53 = vsel %vm420_vm8, %v409_v14, %v428_v49  ;;  %v2458_v31 = vrot.slane %v1040_v23, %v2238_v10 }
 0x137   :  { %v739_v63 = vpop.f32.mrb[8].mxu0  ;;  %v525_v2 = vadd.f32 %v524_v50, %v518_v20  ;;  %v780_v6 = vpop.f32.mrb[8].mxu1  ;;  %v1373_v56 = vrot.slane %v2435_v26, %v2238_v10  ;;  %v2464_v52 = vunpack.c.l.bf16 %v2445_v54  ;;  %v1377_v55 = vrot.slane %v2435_v26, %v2240_v11 }
 0x138   :  { %v740_v5 = vadd.f32 %v739_v63, %v2311_v57  ;;  %v741_v25 = vpop.f32.mrb[9].mxu0  ;;  %v781_v8 = vadd.f32 %v780_v6, %v2326_v1  ;;  %v782_v23 = vpop.f32.mrb[9].mxu1  ;;  %v520_v44 = vmul.f32 %v2314_v58, %v435_v45  ;;  %v521_v60 = vmul.f32 %v2317_v59, %v436_v53  ;;  %v2479_v63 = vld [vmem:[#allocation8 + $0x18] sm:$0xff] }
 0x139   :  { %v742_v7 = vadd.f32 %v741_v25, %v2322_v62  ;;  %v743_v4 = vpop.f32.mrb[10].mxu0  ;;  %v526_v57 = vadd.f32 %v525_v2, %v519_v46  ;;  %v783_v14 = vadd.f32 %v782_v23, %v2330_v3  ;;  %v784_v15 = vpop.f32.mrb[10].mxu1  ;;  %v2475_v13 = vrot.slane %v1373_v56, %v2238_v10 }
 0x13a   :  { %vm869_vm9 = vcmp.gt.f32.partialorder %v740_v5, 0.0  ;;  %v877_v28 = vmul.f32 0.01, %v740_v5  ;;  %v744_v9 = vpop.f32.mrb[11].mxu0  ;;  %vm871_vm11 = vcmp.gt.f32.partialorder %v781_v8, 0.0  ;;  %v785_v1 = vpop.f32.mrb[11].mxu1  ;;  %v1468_v2 = vrot.slane %v2464_v52, %v2238_v10 }
 0x13b   :  { %vm870_vm10 = vcmp.gt.f32.partialorder %v742_v7, 0.0  ;;  %v878_v40 = vmul.f32 0.01, %v742_v7  ;;  %v879_v16 = vmul.f32 0.01, %v781_v8  ;;  %vm872_vm12 = vcmp.gt.f32.partialorder %v783_v14, 0.0 }
 0x13c   :  { %v885_v62 = vsel %vm869_vm9, %v740_v5, %v877_v28  ;;  %v880_v49 = vmul.f32 0.01, %v783_v14  ;;  %v527_v19 = vadd.f32 %v526_v57, %v520_v44  ;;  %v1381_v5 = vrot.slane %v2435_v26, %v2242_v12 }
 0x13d   :  { %v970_v58 = vmul.f32 %v2345_v17, %v885_v62  ;;  %v886_v50 = vsel %vm870_vm10, %v742_v7, %v878_v40  ;;  %v887_v20 = vsel %vm871_vm11, %v781_v8, %v879_v16  ;;  %v1472_v17 = vrot.slane %v2464_v52, %v2240_v11 }
 0x13e   :  { %v971_v3 = vmul.f32 %v2348_v18, %v886_v50  ;;  %v972_v59 = vmul.f32 %v2353_v21, %v887_v20  ;;  %v888_v45 = vsel %vm872_vm12, %v783_v14, %v880_v49  ;;  %v528_v46 = vadd.f32 %v527_v19, %v521_v60 }
 0x13f   :  { %v821_v53 = vpop.f32.mrb[12].mxu0  ;;  %v1385_v25 = vrot.slane %v2435_v26, %v2244_v0  ;;  %v862_v56 = vpop.f32.mrb[12].mxu1  ;;  %v1476_v7 = vrot.slane %v2464_v52, %v2242_v12  ;;  %v1480_v4 = vrot.slane %v2464_v52, %v2244_v0  ;;  %v973_v8 = vmul.f32 %v2356_v22, %v888_v45 }
 0x140   :  { %v978_v18 = vadd.f32 %v971_v3, %v970_v58  ;;  %v822_v21 = vadd.f32 %v821_v53, %v2359_v24  ;;  %529 = vadd.xlane.f32.xlu0 %v528_v46  ;;  %v823_v6 = vpop.f32.mrb[13].mxu0  ;;  %v863_v57 = vadd.f32 %v862_v56, %v2371_v34  ;;  %v864_v28 = vpop.f32.mrb[13].mxu1  ;;  %v2498_v9 = vunpack.c.l.bf16 %v2479_v63 }
 0x141   :  { %v824_v23 = vadd.f32 %v823_v6, %v2368_v33  ;;  %v825_v44 = vpop.f32.mrb[14].mxu0  ;;  %v865_v60 = vadd.f32 %v864_v28, %v2374_v35  ;;  %v866_v40 = vpop.f32.mrb[14].mxu1  ;;  %v2506_v19 = vrot.slane %v1377_v55, %v2238_v10  ;;  %v2509_v35 = vrot.slane %v1381_v5, %v2238_v10 }
 0x142   :  { %v979_v24 = vadd.f32 %v978_v18, %v972_v59  ;;  %vm873_vm13 = vcmp.gt.f32.partialorder %v822_v21, 0.0  ;;  %v881_v14 = vmul.f32 0.01, %v822_v21  ;;  %v826_v15 = vpop.f32.mrb[15].mxu0  ;;  %vm875_vm15 = vcmp.gt.f32.partialorder %v863_v57, 0.0  ;;  %v867_v34 = vpop.f32.mrb[15].mxu1 }
 0x143   :  { %vm874_vm14 = vcmp.gt.f32.partialorder %v824_v23, 0.0  ;;  %v882_v52 = vmul.f32 0.01, %v824_v23  ;;  %v883_v22 = vmul.f32 0.01, %v863_v57  ;;  %vm876_vm0 = vcmp.gt.f32.partialorder %v865_v60, 0.0 }
 0x144   :  { %v980_v16 = vadd.f32 %v979_v24, %v973_v8  ;;  %v889_v33 = vsel %vm873_vm13, %v822_v21, %v881_v14  ;;  %v884_v62 = vmul.f32 0.01, %v865_v60  ;;  %v2513_v20 = vrot.slane %v1468_v2, %v2238_v10 }
 0x145   :  { %v974_v49 = vmul.f32 %v2365_v30, %v889_v33  ;;  %v890_v1 = vsel %vm874_vm14, %v824_v23, %v882_v52  ;;  %v891_v50 = vsel %vm875_vm15, %v863_v57, %v883_v22  ;;  %v2516_v3 = vrot.slane %v1385_v25, %v2238_v10 }
 0x146   :  { %v975_v58 = vmul.f32 %v2377_v38, %v890_v1  ;;  %v892_v59 = vsel %vm876_vm0, %v865_v60, %v884_v62  ;;  %v2519_v46 = vrot.slane %v1472_v17, %v2238_v10  ;;  %v2522_v26 = vrot.slane %v1476_v7, %v2238_v10 }
 0x147   :  { %v1195_v30 = vpop.f32.mrb[16].mxu0  ;;  %v981_v45 = vadd.f32 %v980_v16, %v974_v49  ;;  %v1236_v38 = vpop.f32.mrb[16].mxu1  ;;  %v1813_v2 = vrot.slane %v2498_v9, %v2238_v10  ;;  %v2528_v5 = vrot.slane %v1480_v4, %v2238_v10  ;;  %v2531_v25 = vunpack.c.h.bf16 %v2445_v54 }
 0x148   :  { %v1196_v55 = vadd.f32 %v1195_v30, %v2380_v39  ;;  %v1197_v53 = vpop.f32.mrb[17].mxu0  ;;  %v1237_v21 = vadd.f32 %v1236_v38, %v2393_v51  ;;  %v1238_v6 = vpop.f32.mrb[17].mxu1  ;;  %v976_v56 = vmul.f32 %v2383_v41, %v891_v50  ;;  %v977_v4 = vmul.f32 %v2386_v42, %v892_v59 }
 0x149   :  { %v1198_v18 = vadd.f32 %v1197_v53, %v2390_v47  ;;  %v1199_v17 = vpop.f32.mrb[18].mxu0  ;;  %v982_v39 = vadd.f32 %v981_v45, %v975_v58  ;;  %v1239_v23 = vadd.f32 %v1238_v6, %v2407_v27  ;;  %v1240_v44 = vpop.f32.mrb[18].mxu1  ;;  %v1817_v60 = vrot.slane %v2498_v9, %v2240_v11 }
 0x14a   :  { %vm1325_vm1 = vcmp.gt.f32.partialorder %v1196_v55, 0.0  ;;  %v1333_v7 = vmul.f32 0.01, %v1196_v55  ;;  %v1200_v8 = vpop.f32.mrb[19].mxu0  ;;  %vm1327_vm3 = vcmp.gt.f32.partialorder %v1237_v21, 0.0  ;;  %v1241_v51 = vpop.f32.mrb[19].mxu1  ;;  %v1821_v16 = vrot.slane %v2498_v9, %v2242_v12 }
 0x14b   :  { %vm1326_vm2 = vcmp.gt.f32.partialorder %v1198_v18, 0.0  ;;  %v1334_v54 = vmul.f32 0.01, %v1198_v18  ;;  %v1335_v57 = vmul.f32 0.01, %v1237_v21  ;;  %vm1328_vm4 = vcmp.gt.f32.partialorder %v1239_v23, 0.0 }
 0x14c   :  { %v1341_v47 = vsel %vm1325_vm1, %v1196_v55, %v1333_v7  ;;  %v1336_v28 = vmul.f32 0.01, %v1239_v23  ;;  %v983_v24 = vadd.f32 %v982_v39, %v976_v56  ;;  %v1825_v33 = vrot.slane %v2498_v9, %v2244_v0 }
 0x14d   :  { %v1426_v41 = vmul.f32 %v2411_v29, %v1341_v47  ;;  %v1342_v14 = vsel %vm1326_vm2, %v1198_v18, %v1334_v54  ;;  %v1343_v15 = vsel %vm1327_vm3, %v1237_v21, %v1335_v57  ;;  %v1484_v29 = vrot.slane %v2531_v25, %v2238_v10 }
 0x14e   :  { %v1427_v27 = vmul.f32 %v2418_v61, %v1342_v14  ;;  %v1428_v42 = vmul.f32 %v2440_v48, %v1343_v15  ;;  %v1344_v40 = vsel %vm1328_vm4, %v1239_v23, %v1336_v28  ;;  %v984_v52 = vadd.f32 %v983_v24, %v977_v4 }
 0x14f   :  { %v1277_v22 = vpop.f32.mrb[20].mxu0  ;;  %v1488_v62 = vrot.slane %v2531_v25, %v2240_v11  ;;  %v1318_v49 = vpop.f32.mrb[20].mxu1  ;;  %v1492_v1 = vrot.slane %v2531_v25, %v2242_v12  ;;  %v1496_v58 = vrot.slane %v2531_v25, %v2244_v0  ;;  %v1429_v50 = vmul.f32 %v2443_v37, %v1344_v40 }
 0x150   :  { %v1434_v34 = vadd.f32 %v1427_v27, %v1426_v41  ;;  %v1278_v61 = vadd.f32 %v1277_v22, %v2449_v32  ;;  %985 = vadd.xlane.f32.xlu0 %v984_v52  ;;  %v1279_v48 = vpop.f32.mrb[21].mxu0  ;;  %v1319_v45 = vadd.f32 %v1318_v49, %v2455_v43  ;;  %v1320_v55 = vpop.f32.mrb[21].mxu1  ;;  %v2560_v53 = vunpack.c.h.bf16 %v2479_v63 }
 0x151   :  { %v1280_v30 = vadd.f32 %v1279_v48, %v2452_v36  ;;  %v1281_v59 = vpop.f32.mrb[22].mxu0  ;;  %v1321_v17 = vadd.f32 %v1320_v55, %v2458_v31  ;;  %v1322_v21 = vpop.f32.mrb[22].mxu1  ;;  %v1853_v7 = vrot.slane %v1813_v2, %v2238_v10  ;;  %v1857_v31 = vrot.slane %v1817_v60, %v2238_v10 }
 0x152   :  { %v1435_v32 = vadd.f32 %v1434_v34, %v1428_v42  ;;  %vm1329_vm5 = vcmp.gt.f32.partialorder %v1278_v61, 0.0  ;;  %v1337_v38 = vmul.f32 0.01, %v1278_v61  ;;  %v1282_v18 = vpop.f32.mrb[23].mxu0  ;;  %vm1331_vm7 = vcmp.gt.f32.partialorder %v1319_v45, 0.0  ;;  %v1323_v56 = vpop.f32.mrb[23].mxu1 }
 0x153   :  { %vm1330_vm6 = vcmp.gt.f32.partialorder %v1280_v30, 0.0  ;;  %v1338_v25 = vmul.f32 0.01, %v1280_v30  ;;  %v1339_v37 = vmul.f32 0.01, %v1319_v45  ;;  %vm1332_vm8 = vcmp.gt.f32.partialorder %v1321_v17, 0.0 }
 0x154   :  { %v1345_v6 = vsel %vm1329_vm5, %v1278_v61, %v1337_v38  ;;  %v1340_v36 = vmul.f32 0.01, %v1321_v17  ;;  %v1436_v43 = vadd.f32 %v1435_v32, %v1429_v50  ;;  %v1861_v8 = vrot.slane %v1821_v16, %v2238_v10 }
 0x155   :  { %v1430_v39 = vmul.f32 %v2475_v13, %v1345_v6  ;;  %v1346_v63 = vsel %vm1330_vm6, %v1280_v30, %v1338_v25  ;;  %v1865_v23 = vrot.slane %v1825_v33, %v2238_v10  ;;  %v1347_v44 = vsel %vm1331_vm7, %v1319_v45, %v1339_v37 }
 0x156   :  { %v1431_v4 = vmul.f32 %v2506_v19, %v1346_v63  ;;  %v1524_v57 = vrot.slane %v1484_v29, %v2238_v10  ;;  %v1348_v47 = vsel %vm1332_vm8, %v1321_v17, %v1340_v36  ;;  %v1528_v28 = vrot.slane %v1488_v62, %v2238_v10 }
 0x157   :  { %v1651_v54 = vpop.f32.mrb[24].mxu0  ;;  %v1437_v13 = vadd.f32 %v1436_v43, %v1430_v39  ;;  %v1692_v2 = vpop.f32.mrb[24].mxu1  ;;  %v1829_v24 = vrot.slane %v2560_v53, %v2238_v10  ;;  %v1532_v41 = vrot.slane %v1492_v1, %v2238_v10  ;;  %v1536_v14 = vrot.slane %v1496_v58, %v2238_v10 }
 0x158   :  { %v1652_v51 = vadd.f32 %v1651_v54, %v2513_v20  ;;  %v1653_v9 = vpop.f32.mrb[25].mxu0  ;;  %v1693_v60 = vadd.f32 %v1692_v2, %v2522_v26  ;;  %v1694_v27 = vpop.f32.mrb[25].mxu1  ;;  %v1432_v42 = vmul.f32 %v2509_v35, %v1347_v44  ;;  %v1433_v33 = vmul.f32 %v2516_v3, %v1348_v47 }
 0x159   :  { %v1654_v19 = vadd.f32 %v1653_v9, %v2519_v46  ;;  %v1655_v15 = vpop.f32.mrb[26].mxu0  ;;  %v1438_v40 = vadd.f32 %v1437_v13, %v1431_v4  ;;  %v1695_v22 = vadd.f32 %v1694_v27, %v2528_v5  ;;  %v1696_v16 = vpop.f32.mrb[26].mxu1  ;;  %v1833_v1 = vrot.slane %v2560_v53, %v2240_v11 }
 0x15a   :  { %vm1781_vm9 = vcmp.gt.f32.partialorder %v1652_v51, 0.0  ;;  %v1789_v20 = vmul.f32 0.01, %v1652_v51  ;;  %v1656_v52 = vpop.f32.mrb[27].mxu0  ;;  %vm1783_vm11 = vcmp.gt.f32.partialorder %v1693_v60, 0.0  ;;  %v1697_v26 = vpop.f32.mrb[27].mxu1  ;;  %v1869_v59 = vrot.slane %v1829_v24, %v2238_v10 }
 0x15b   :  { %vm1782_vm10 = vcmp.gt.f32.partialorder %v1654_v19, 0.0  ;;  %v1790_v29 = vmul.f32 0.01, %v1654_v19  ;;  %v1791_v62 = vmul.f32 0.01, %v1693_v60  ;;  %vm1784_vm12 = vcmp.gt.f32.partialorder %v1695_v22, 0.0 }
 0x15c   :  { %v1797_v46 = vsel %vm1781_vm9, %v1652_v51, %v1789_v20  ;;  %v1792_v34 = vmul.f32 0.01, %v1695_v22  ;;  %v1439_v61 = vadd.f32 %v1438_v40, %v1432_v42  ;;  %v1837_v18 = vrot.slane %v2560_v53, %v2242_v12 }
 0x15d   :  { %v1882_v48 = vmul.f32 %v1853_v7, %v1797_v46  ;;  %v1798_v35 = vsel %vm1782_vm10, %v1654_v19, %v1790_v29  ;;  %v1799_v49 = vsel %vm1783_vm11, %v1693_v60, %v1791_v62  ;;  %v1841_v17 = vrot.slane %v2560_v53, %v2244_v0 }
 0x15e   :  { %v1883_v58 = vmul.f32 %v1857_v31, %v1798_v35  ;;  %v1884_v5 = vmul.f32 %v1861_v8, %v1799_v49  ;;  %v1800_v50 = vsel %vm1784_vm12, %v1695_v22, %v1792_v34  ;;  %v1440_v30 = vadd.f32 %v1439_v61, %v1433_v33 }
 0x15f   :  { %v1733_v3 = vpop.f32.mrb[28].mxu0  ;;  %v1774_v38 = vpop.f32.mrb[28].mxu1  ;;  %v1885_v21 = vmul.f32 %v1865_v23, %v1800_v50  ;;  %v1873_v25 = vrot.slane %v1833_v1, %v2238_v10  ;;  %v1877_v54 = vrot.slane %v1837_v18, %v2238_v10  ;;  %v1881_v13 = vrot.slane %v1841_v17, %v2238_v10 }
 0x160   :  { %v1890_v45 = vadd.f32 %v1883_v58, %v1882_v48  ;;  %v1734_v55 = vadd.f32 %v1733_v3, %v1524_v57  ;;  %1441 = vadd.xlane.f32.xlu1 %v1440_v30  ;;  %v1735_v32 = vpop.f32.mrb[29].mxu0  ;;  %v1775_v6 = vadd.f32 %v1774_v38, %v1532_v41  ;;  %v1776_v36 = vpop.f32.mrb[29].mxu1  ;;  %v1901_v40 = vstv %s2604_s4 }
 0x161   :  { %v1736_v11 = vadd.f32 %v1735_v32, %v1528_v28  ;;  %v1737_v37 = vpop.f32.mrb[30].mxu0  ;;  %v1777_v63 = vadd.f32 %v1776_v36, %v1536_v14  ;;  %v1778_v7 = vpop.f32.mrb[30].mxu1  ;;  %vm1909_vm1 = vcmask 7168  }
 0x162   :  { %v1891_v56 = vadd.f32 %v1890_v45, %v1884_v5  ;;  %vm1785_vm13 = vcmp.gt.f32.partialorder %v1734_v55, 0.0  ;;  %v1793_v43 = vmul.f32 0.01, %v1734_v55  ;;  %v1738_v39 = vpop.f32.mrb[31].mxu0  ;;  %vm1787_vm15 = vcmp.gt.f32.partialorder %v1775_v6, 0.0  ;;  %v1779_v53 = vpop.f32.mrb[31].mxu1 }
 0x163   :  { %vm1786_vm14 = vcmp.gt.f32.partialorder %v1736_v11, 0.0  ;;  %v1794_v31 = vmul.f32 0.01, %v1736_v11  ;;  %v1795_v12 = vmul.f32 0.01, %v1775_v6  ;;  %vm1788_vm0 = vcmp.gt.f32.partialorder %v1777_v63, 0.0 }
 0x164   :  { %v1892_v8 = vadd.f32 %v1891_v56, %v1885_v21  ;;  %v1801_v44 = vsel %vm1785_vm13, %v1734_v55, %v1793_v43  ;;  %v1796_v0 = vmul.f32 0.01, %v1777_v63 }
 0x165   :  { %v1886_v23 = vmul.f32 %v1869_v59, %v1801_v44  ;;  %v1802_v4 = vsel %vm1786_vm14, %v1736_v11, %v1794_v31  ;;  %v1803_v47 = vsel %vm1787_vm15, %v1775_v6, %v1795_v12 }
 0x166   :  { %v1887_v57 = vmul.f32 %v1873_v25, %v1802_v4  ;;  %v1804_v51 = vsel %vm1788_vm0, %v1777_v63, %v1796_v0  ;;  %v1888_v9 = vmul.f32 %v1877_v54, %v1803_v47 }
 0x167   :  { %v1893_v28 = vadd.f32 %v1892_v8, %v1886_v23  ;;  %v1889_v24 = vmul.f32 %v1881_v13, %v1804_v51 }
 0x169   :  { %v1894_v2 = vadd.f32 %v1893_v28, %v1887_v57 }
 0x16b   :  { %v1895_v41 = vadd.f32 %v1894_v2, %v1888_v9 }
 0x16d   :  { %v1896_v14 = vadd.f32 %v1895_v41, %v1889_v24 }
 0x16f   :  { %1897 = vadd.xlane.f32.xlu1 %v1896_v14 }
 0x1cd   :  { %v530_v19 = vpop.xlane.xlu0 %529 }
 0x1dd   :  { %v986_v15 = vpop.xlane.xlu0 %985 }
 0x1de   :  { %v987_v27 = vadd.f32 %v986_v15, %v530_v19 }
 0x1ed   :  { %v1442_v60 = vpop.xlane.xlu1 %1441 }
 0x1ee   :  { %v1443_v42 = vadd.f32 %v1442_v60, %v987_v27 }
 0x1fc   :  { %v1898_v20 = vpop.xlane.xlu1 %1897 }
 0x1fd   :  { %v1899_v52 = vadd.f32 %v1898_v20, %v1443_v42 }
 0x1ff   :  { %v1902_v10 = vadd.f32 %v1901_v40, %v1899_v52 }
 0x201   :  { %v1903_v22 = vsub.f32 0.0, %v1902_v10 }
 0x203   :  { %v1904_v16 = vmul.f32 1.442695, %v1903_v22 }
 0x205   :  { %2005 = vpow2.f32 %v1904_v16 }
 0x20f   :  { %v2006_v33 = vpop.eup %2005 }
 0x210   :  { %v1906_v29 = vadd.f32 1.0, %v2006_v33 }
 0x212   :  { %2007 = vrcp.f32 %v1906_v29 }
 0x21c   :  { %v2008_v62 = vpop.eup %2007 }
 0x21d   :  { %1910 = vst.msk [vmem:[%s2605_s5] sm:$0xff] %vm1909_vm1, %v2008_v62 }
 0x21e   :  { %1915 = vsyncpa [#allocation4], 1 }
 0x21f   :  { %1916 = vsyncpa [#allocation6], 1 }
 0x220   :  { %1917 = vsyncpa [#allocation9], 1 }

</bundles_post_ra>
